<compile_context>
chip_gen: v7x
topology: tpu7x:2x2x1
jax: 0.10.0
libtpu: 0.0.40
codegen_flags: <defaults>
</compile_context>

<pallas_src>
import jax
import jax.numpy as jnp
from jax.experimental import pallas as pl
from jax.experimental.pallas import tpu as pltpu


def _round_up(x: int, m: int) -> int:
    return (x + m - 1) // m * m


def _tpu_kind() -> str:
    try:
        return jax.devices()[0].device_kind.lower()
    except Exception:
        return ""


def _min_grid_steps(kind: str) -> int:
    # v7x: 2 TensorCores/chip -> want >= 2 tiles per core so the 'parallel'
    # axis shards and each core can still overlap DMA with writeback.
    if "v7" in kind:
        return 4
    return 1  # v5e / v6e: single TC; fewer, larger steps minimize per-step overhead.


def _per_buffer_vmem_budget(kind: str) -> int:
    # v7x has 64 MiB physical VMEM per TC (vs 128 MiB on v5e/v6e) -> smaller budget.
    if "v7" in kind:
        return 6 << 20
    return 10 << 20


def _choose_tile_n(Dp: int, K_tot: int, B: int, out_itemsize: int,
                   min_steps: int, per_buffer_budget: int) -> int:
    """Largest 128-multiple tile dividing Dp that fits the per-buffer VMEM
    budget and (when possible) yields at least `min_steps` grid steps."""
    assert Dp % 128 == 0
    candidates = [t for t in range(128, Dp + 1, 128) if Dp % t == 0]

    def fits(t):
        return (K_tot * t * 2 + B * t * out_itemsize) <= per_buffer_budget

    fitting = [t for t in candidates if fits(t)] or [128]
    stepped = [t for t in fitting if Dp // t >= min_steps]
    pool = stepped if stepped else fitting
    return max(pool)


def _make_kernel(k_slices, scale_first: bool):
    """Kernel body: one resident concatenated input block, one streamed R tile."""

    def kernel(x_ref, r_ref, o_ref):
        acc = None
        for i, (k0, k1) in enumerate(k_slices):          # static, 16-aligned slices
            p = jnp.dot(x_ref[:, k0:k1], r_ref[k0:k1, :],  # MXU, f32 accumulation
                        preferred_element_type=jnp.float32)
            if i == 0:
                acc = p * jnp.float32(0.01) if scale_first else p
            else:
                acc = acc * p                             # combine stays f32 (v5e-safe)
        o_ref[...] = acc.astype(o_ref.dtype)

    return kernel


def _xla_forward(input_list, random_matrices, first_prescaled):
    """Plain fused-XLA path for tiny shapes (original semantics, f32)."""
    projs = [jnp.dot(x.astype(jnp.float32), r.astype(jnp.float32))
             for x, r in zip(input_list, random_matrices)]
    out = projs[0] if first_prescaled else projs[0] / 100.0
    for p in projs[1:]:
        out = out * p
    return out


def random_layer_forward(input_list, random_matrices, *,
                         first_prescaled: bool = False,
                         compute_dtype=jnp.bfloat16,
                         out_dtype=jnp.float32,
                         force_pallas: bool = False):
    """Pallas implementation of RandomLayer.forward.

    input_list:       list of arrays [B, K_i]
    random_matrices:  list of arrays [K_i, D]
    first_prescaled:  True if random_matrices[0] already has the 1/100 folded in.
    """
    assert len(input_list) == len(random_matrices), (
        f"Expected {len(random_matrices)} inputs, but got {len(input_list)}."
    )
    n = len(input_list)
    B = input_list[0].shape[0]
    D = random_matrices[0].shape[1]

    # Tiny-shape dispatch: pallas_call fixed cost (~1-2us) exceeds the whole
    # DMA + compute at these sizes; fused XLA wins outright.
    if not force_pallas and D <= 512 and B <= 64:
        return _xla_forward(input_list, random_matrices, first_prescaled).astype(out_dtype)

    c_itemsize = jnp.dtype(compute_dtype).itemsize
    o_itemsize = jnp.dtype(out_dtype).itemsize

    # --- pad each K_i to a multiple of 16 (bf16 sublane packing), concat -----
    xs, rs, k_slices = [], [], []
    off = 0
    for x, r in zip(input_list, random_matrices):
        K = x.shape[1]
        Kp = _round_up(K, 16)
        if Kp != K:
            x = jnp.pad(x, ((0, 0), (0, Kp - K)))
            r = jnp.pad(r, ((0, Kp - K), (0, 0)))
        xs.append(x.astype(compute_dtype))
        rs.append(r.astype(compute_dtype))
        k_slices.append((off, off + Kp))
        off += Kp
    K_tot = off
    x_cat = jnp.concatenate(xs, axis=1)          # [B, K_tot]  (single tiny DMA stream)
    r_cat = jnp.concatenate(rs, axis=0)          # [K_tot, D]  (dominant HBM traffic)

    # --- pad D to a 128 multiple: lane-dense unmasked stores, clean tiling ---
    Dp = _round_up(D, 128)
    if Dp != D:
        r_cat = jnp.pad(r_cat, ((0, 0), (0, Dp - D)))

    # --- generation-aware tiling ----------------------------------------------
    kind = _tpu_kind()
    tn = _choose_tile_n(Dp, K_tot, B, o_itemsize,
                        _min_grid_steps(kind), _per_buffer_vmem_budget(kind))
    grid = (Dp // tn,)

    # Explicit scoped-VMEM limit sized from the chosen tile (double-buffered R
    # + out + resident inputs, with headroom); avoids v5e's 16 MiB default
    # constraining bigger tiles while staying well inside v7x's 64 MiB.
    r_bytes = K_tot * tn * c_itemsize
    o_bytes = B * tn * o_itemsize
    x_bytes = B * K_tot * c_itemsize
    vmem_limit = int(min(max(4 * (r_bytes + o_bytes + x_bytes), 16 << 20), 40 << 20))

    kernel = _make_kernel(tuple(k_slices), not first_prescaled)

    cost = pl.CostEstimate(
        flops=2 * B * K_tot * Dp + n * B * Dp,
        transcendentals=0,
        bytes_accessed=c_itemsize * (B * K_tot + K_tot * Dp) + o_itemsize * B * Dp,
    )

    out = pl.pallas_call(
        kernel,
        out_shape=jax.ShapeDtypeStruct((B, Dp), out_dtype),
        grid_spec=pltpu.PrefetchScalarGridSpec(
            num_scalar_prefetch=0,
            grid=grid,
            in_specs=[
                pl.BlockSpec((B, K_tot), lambda j: (0, 0)),    # resident inputs
                pl.BlockSpec((K_tot, tn), lambda j: (0, j)),   # streamed weights
            ],
            out_specs=pl.BlockSpec((B, tn), lambda j: (0, j)),
        ),
        compiler_params=pltpu.CompilerParams(
            dimension_semantics=("parallel",),
            vmem_limit_bytes=vmem_limit,
        ),
        cost_estimate=cost,
    )(x_cat, r_cat)

    return out[:, :D] if Dp != D else out


def random_layer_reference(input_list, random_matrices):
    """Original module semantics, f32."""
    projs = [jnp.dot(x, r) for x, r in zip(input_list, random_matrices)]
    out = projs[0] / 100.0
    for p in projs[1:]:
        out = out * p
    return out


if __name__ == "__main__":
    # Shapes consistent with CDAN usage: inputs = [features, class-probs],
    # module-default output_dim = 1024, small batch.
    key = jax.random.PRNGKey(0)
    k_params, k_inputs = jax.random.split(key)

    input_dim_list = [64, 31]      # 31 exercises the 16-sublane padding path
    output_dim = 1024              # module default -> Pallas path
    batch = 8

    # Deterministic "torch.randn"-style non-trainable parameters.
    param_keys = jax.random.split(k_params, len(input_dim_list))
    random_matrices = [
        jax.random.normal(pk, (d, output_dim), dtype=jnp.float32)
        for pk, d in zip(param_keys, input_dim_list)
    ]
    # Init-time folding of the fixed 1/100 scale into the non-trainable matrix.
    prescaled_matrices = [random_matrices[0] / 100.0] + random_matrices[1:]

    input_keys = jax.random.split(k_inputs, len(input_dim_list))
    input_list = [
        jax.random.normal(ik, (batch, d), dtype=jnp.float32)
        for ik, d in zip(input_keys, input_dim_list)
    ]

    # --- Pallas path (D=1024) -------------------------------------------------
    out = random_layer_forward(input_list, prescaled_matrices, first_prescaled=True)
    out = jax.block_until_ready(out)
    ref = random_layer_reference(input_list, random_matrices)
    assert out.shape == (batch, output_dim)
    err = float(jnp.max(jnp.abs(out - ref)))
    scale = float(jnp.max(jnp.abs(ref)))
    assert err <= 3e-2 * scale, f"Pallas path mismatch: err={err}, scale={scale}"

    # --- tiny-shape XLA fallback path (D=256) ----------------------------------
    small_D = 256
    small_r = [r[:, :small_D] for r in random_matrices]
    out_s = random_layer_forward(input_list, small_r, first_prescaled=False)
    out_s = jax.block_until_ready(out_s)
    ref_s = random_layer_reference(input_list, small_r)
    err_s = float(jnp.max(jnp.abs(out_s - ref_s)))
    scale_s = float(jnp.max(jnp.abs(ref_s)))
    assert out_s.shape == (batch, small_D)
    assert err_s <= 3e-2 * scale_s, f"fallback path mismatch: err={err_s}"

    print("KERNEL_OK")
</pallas_src>

<mosaic_0001>
module attributes {stable_mosaic.version = 11 : i64} {
  func.func @kernel(%arg0: i32, %arg1: memref<8x96xbf16, #tpu.memory_space<vmem>>, %arg2: memref<96x1024xbf16, #tpu.memory_space<vmem>>, %arg3: memref<8x1024xf32, #tpu.memory_space<vmem>>) attributes {dimension_semantics = [#tpu.dimension_semantics<parallel>], iteration_bounds = array<i64: 1>, scalar_prefetch = 0 : i64, scratch_operands = 0 : i64, tpu.core_type = #tpu.core_type<tc>, window_params = [{pipeline_mode = #tpu.pipeline_mode<synchronous>, transform_indices = @transform_0, window_bounds = array<i64: 8, 96>}, {transform_indices = @transform_1, window_bounds = array<i64: 96, 1024>}, {transform_indices = @transform_2, window_bounds = array<i64: 8, 1024>}]} {
    %c0 = arith.constant 0 : index
    %c0_0 = arith.constant 0 : index
    %0 = vector.load %arg1[%c0, %c0_0] : memref<8x96xbf16, #tpu.memory_space<vmem>>, vector<8x64xbf16>
    %c0_1 = arith.constant 0 : index
    %c0_2 = arith.constant 0 : index
    %1 = vector.load %arg2[%c0_1, %c0_2] : memref<96x1024xbf16, #tpu.memory_space<vmem>>, vector<64x1024xbf16>
    %cst = arith.constant dense<0.000000e+00> : vector<8x1024xf32>
    %2 = tpu.matmul %0, %1, %cst {dimension_numbers = #tpu.dot_dimension_numbers<[1], [0], [0], [1], [0, 0, 1, 1], [], []>} : vector<8x64xbf16>, vector<64x1024xbf16>, vector<8x1024xf32> -> vector<8x1024xf32>
    %c0_3 = arith.constant 0 : index
    %c64 = arith.constant 64 : index
    %3 = vector.load %arg1[%c0_3, %c64] : memref<8x96xbf16, #tpu.memory_space<vmem>>, vector<8x32xbf16>
    %c64_4 = arith.constant 64 : index
    %c0_5 = arith.constant 0 : index
    %4 = vector.load %arg2[%c64_4, %c0_5] : memref<96x1024xbf16, #tpu.memory_space<vmem>>, vector<32x1024xbf16>
    %cst_6 = arith.constant dense<0.000000e+00> : vector<8x1024xf32>
    %5 = tpu.matmul %3, %4, %cst_6 {dimension_numbers = #tpu.dot_dimension_numbers<[1], [0], [0], [1], [0, 0, 1, 1], [], []>} : vector<8x32xbf16>, vector<32x1024xbf16>, vector<8x1024xf32> -> vector<8x1024xf32>
    %6 = arith.mulf %2, %5 : vector<8x1024xf32>
    %c0_7 = arith.constant 0 : index
    %c0_8 = arith.constant 0 : index
    %7 = vector.load %arg3[%c0_7, %c0_8] : memref<8x1024xf32, #tpu.memory_space<vmem>>, vector<8x1024xf32>
    tpu.vector_store %arg3[%c0_7, %c0_8], %6 {strides = array<i32>} : memref<8x1024xf32, #tpu.memory_space<vmem>>, vector<8x1024xf32>,
    return
  }
  func.func @transform_0(%arg0: i32) -> (i32, i32) {
    %c0_i32 = arith.constant 0 : i32
    %c0_i32_0 = arith.constant 0 : i32
    %c0_i32_1 = arith.constant 0 : i32
    return %c0_i32, %c0_i32_0 : i32, i32
  }
  func.func @transform_1(%arg0: i32) -> (i32, i32) {
    %c0_i32 = arith.constant 0 : i32
    %c0_i32_0 = arith.constant 0 : i32
    return %c0_i32, %arg0 : i32, i32
  }
  func.func @transform_2(%arg0: i32) -> (i32, i32) {
    %c0_i32 = arith.constant 0 : i32
    %c0_i32_0 = arith.constant 0 : i32
    return %c0_i32, %arg0 : i32, i32
  }
}

</mosaic_0001>

<bundles_post_ra>
// kernel: tpu_custom_call.1
= control target key start
LH: loop header
LB: loop body
LE: loop exit
PB: predicated region body
PF: predicated region fallthrough
CT: control target
= control target key end

     0   :  { %7 = vsyncpa [#allocation3], 0  ;;  %s949_s0 = inlined_call_operand.hbm [shape: bf16[8,96], index: 0, kind: input, shape index: {}]   ;;  %s950_s1 = inlined_call_operand.hbm [shape: bf16[96,1024], index: 1, kind: input, shape index: {}]   ;;  %s951_s2 = inlined_call_operand.hbm [shape: f32[8,1024], index: 2, kind: output, shape index: {}]  }
   0x1   :  { %8 = vsyncpa [#allocation6], 0 }
   0x2   :  { %9 = vsyncpa [#allocation4], 0  ;;  %s838_s9 = smov [#allocation2]   ;;  %s839_s11 = smov [#allocation5]  }
   0x3   :  { %s16_s10 = sshll.u32 %s838_s9, 4  ;;  %s25_s12 = sshll.u32 %s839_s11, 4  ;;  %s17_s10 = int_to_ptr.vmem [resolvable:$true] %s16_s10  ;;  %s860_s12 = int_to_ptr.vmem [resolvable:$true] %s25_s12 }
   0x4   :  { %s766_s15 = scalar_lea.hbm %s949_s0, 64 }
   0x5   :  { %p767_p0 = scmp.ne.s32.totalorder %s949_s0, %s766_s15  ;;  %p770_p1 = scmp.lt.u32.totalorder %s766_s15, %s949_s0 }
   0x7   :  { %p772_p2 = pnand %p770_p1, %p767_p0 }
   0x9   :  { %775 = shalt.err (!%p772_p2)
}
   0xa   :  { %s776_s20 = scalar_lea.vmem %s17_s10, 64  ;;  %p781_p4 = scmp.lt.s32.totalorder %s17_s10, %s17_s10 }
   0xb   :  { %p777_p3 = scmp.ne.s32.totalorder %s17_s10, %s776_s20  ;;  %p782_p5 = scmp.lt.s32.totalorder %s776_s20, %s776_s20 }
   0xd   :  { %p783_p6 = por %p782_p5, %p781_p4 }
   0xf   :  { %p784_p7 = pnand %p783_p6, %p777_p3 }
  0x11   :  { %787 = shalt.err (!%p784_p7)
}
  0x12   :  { %19 = dma.hbm_to_vmem [thread:$0]  %s949_s0, 64, %s17_s10, [#allocation3]  }
  0x13   :  { %s788_s25 = scalar_lea.hbm %s950_s1, 6144 }
  0x14   :  { %p789_p8 = scmp.ne.s32.totalorder %s950_s1, %s788_s25  ;;  %p792_p9 = scmp.lt.u32.totalorder %s788_s25, %s950_s1 }
  0x16   :  { %p794_p10 = pnand %p792_p9, %p789_p8 }
  0x18   :  { %797 = shalt.err (!%p794_p10)
}
  0x19   :  { %s798_s30 = scalar_lea.vmem %s860_s12, 6144  ;;  %p803_p12 = scmp.lt.s32.totalorder %s860_s12, %s860_s12 }
  0x1a   :  { %p799_p11 = scmp.ne.s32.totalorder %s860_s12, %s798_s30  ;;  %p804_p13 = scmp.lt.s32.totalorder %s798_s30, %s798_s30 }
  0x1c   :  { %p805_p0 = por %p804_p13, %p803_p12 }
  0x1e   :  { %p806_p1 = pnand %p805_p0, %p799_p11 }
  0x20   :  { %809 = shalt.err (!%p806_p1)
}
  0x21   :  { %s840_s0 = smov 512   ;;  %s841_s3 = smov 32  }
  0x22   :  { %31 = dma.hbm_to_vmem [thread:$0]  %s950_s1, 6144, %s860_s12, [#allocation6], %s840_s0, %s840_s0, %s841_s3  }
  0x23   :  { %832 = dma.done.wait [#allocation3], 64  }
  0x24   :  { %833 = vsyncadd [#allocation3], 4294967232 }
  0x25   :  { %834 = dma.done.wait [#allocation6], 6144  }
  0x26   :  { %835 = vsyncadd [#allocation6], 4294961152  ;;  %v842_v0 = vmov 0   ;;  %v893_v1 = vld [vmem:[#allocation2] sm:$0xf]  ;;  %v40_v2 = vld [vmem:[#allocation5] sm:$0xff] }
  0x27   :  { %268 = vmatprep.mubr.bf16.mxu0 %v842_v0  ;;  %309 = vmatprep.mubr.bf16.mxu1 %v842_v0  ;;  %v44_v3 = vld [vmem:[#allocation5 + $0x20] sm:$0xff]  ;;  %v737_v4 = vcombine.low %v893_v1, %v893_v1  ;;  %v41_v6 = vld [vmem:[#allocation5 + $0x8] sm:$0xff]  ;;  %s843_s1 = smov 64   ;;  %v42_v33 = vld [vmem:[#allocation5 + $0x10] sm:$0xff]  ;;  %vm232_vm0 = vcmask 523264   ;;  %vm501_vm1 = vcmask 261120  }
  0x28   :  { %v702_v5 = vcombine.high %v40_v2, %v44_v3  ;;  %v45_v7 = vld [vmem:[#allocation5 + $0x28] sm:$0xff]  ;;  %v701_v8 = vcombine.low %v40_v2, %v44_v3  ;;  %v48_v9 = vld [vmem:[#allocation5 + $0x40] sm:$0xff]  ;;  %v46_v34 = vld [vmem:[#allocation5 + $0x30] sm:$0xff]  ;;  %s844_s6 = smov [#allocation7]  }
  0x29   :  { %v704_v10 = vcombine.high %v41_v6, %v45_v7  ;;  %v703_v11 = vcombine.low %v41_v6, %v45_v7  ;;  %v52_v12 = vld [vmem:[#allocation5 + $0x60] sm:$0xff]  ;;  %v49_v13 = vld [vmem:[#allocation5 + $0x48] sm:$0xff]  ;;  %419 = vrot.lane.b32.xlu0 %v737_v4, %s843_s1  ;;  %v43_v35 = vld [vmem:[#allocation5 + $0x18] sm:$0xff]  ;;  %v706_v39 = vcombine.high %v42_v33, %v46_v34  ;;  %v705_v51 = vcombine.low %v42_v33, %v46_v34  ;;  %s691_s7 = sshll.u32 %s844_s6, 4  ;;  %s692_s7 = int_to_ptr.vmem [resolvable:$true] %s691_s7 }
  0x2a   :  { %v53_v14 = vld [vmem:[#allocation5 + $0x68] sm:$0xff]  ;;  %236 = vmatprep.subr.bf16.mxu0 %v702_v5  ;;  %v710_v15 = vcombine.high %v48_v9, %v52_v12  ;;  %v56_v17 = vld [vmem:[#allocation5 + $0x80] sm:$0xff]  ;;  %v709_v20 = vcombine.low %v48_v9, %v52_v12  ;;  %v47_v36 = vld [vmem:[#allocation5 + $0x38] sm:$0xff]  ;;  %s810_s8 = scalar_lea.vmem %s692_s7, 1024  ;;  %p815_p3 = scmp.lt.s32.totalorder %s692_s7, %s692_s7 }
  0x2b   :  { %v712_v16 = vcombine.high %v49_v13, %v53_v14  ;;  %v60_v18 = vld [vmem:[#allocation5 + $0xa0] sm:$0xff]  ;;  %v57_v19 = vld [vmem:[#allocation5 + $0x88] sm:$0xff]  ;;  %277 = vmatprep.subr.bf16.mxu1 %v704_v10  ;;  %237 = vmatpush1.bf16.msra.mxu0 %v701_v8  ;;  %v711_v22 = vcombine.low %v49_v13, %v53_v14  ;;  %v50_v40 = vld [vmem:[#allocation5 + $0x50] sm:$0xff]  ;;  %v708_v43 = vcombine.high %v43_v35, %v47_v36  ;;  %p811_p2 = scmp.ne.s32.totalorder %s692_s7, %s810_s8  ;;  %p816_p4 = scmp.lt.s32.totalorder %s810_s8, %s810_s8 }
  0x2c   :  { %v61_v21 = vld [vmem:[#allocation5 + $0xa8] sm:$0xff]  ;;  %278 = vmatpush1.bf16.msra.mxu1 %v703_v11  ;;  %238 = vmatprep.subr.bf16.mxu0 %v710_v15  ;;  %v718_v23 = vcombine.high %v56_v17, %v60_v18  ;;  %v64_v25 = vld [vmem:[#allocation5 + $0xc0] sm:$0xff]  ;;  %v717_v29 = vcombine.low %v56_v17, %v60_v18  ;;  %v54_v41 = vld [vmem:[#allocation5 + $0x70] sm:$0xff]  ;;  %v707_v52 = vcombine.low %v43_v35, %v47_v36 }
  0x2d   :  { %279 = vmatprep.subr.bf16.mxu1 %v712_v16  ;;  %v720_v24 = vcombine.high %v57_v19, %v61_v21  ;;  %v68_v26 = vld [vmem:[#allocation5 + $0xe0] sm:$0xff]  ;;  %v65_v27 = vld [vmem:[#allocation5 + $0xc8] sm:$0xff]  ;;  %v719_v30 = vcombine.low %v57_v19, %v61_v21  ;;  %v897_v42 = vld [vmem:[#allocation5 + $0x110] sm:$0xff]  ;;  %v714_v53 = vcombine.high %v50_v40, %v54_v41  ;;  %v713_v59 = vcombine.low %v50_v40, %v54_v41  ;;  %p817_p5 = por %p816_p4, %p815_p3 }
  0x2e   :  { %v69_v28 = vld [vmem:[#allocation5 + $0xe8] sm:$0xff]  ;;  %v726_v31 = vcombine.high %v64_v25, %v68_v26  ;;  %v725_v37 = vcombine.low %v64_v25, %v68_v26  ;;  %v899_v44 = vld [vmem:[#allocation5 + $0x130] sm:$0xff]  ;;  %v901_v45 = vld [vmem:[#allocation5 + $0x118] sm:$0xff] }
  0x2f   :  { %239 = vmatpush1.bf16.msra.mxu0 %v709_v20  ;;  %v728_v32 = vcombine.high %v65_v27, %v69_v28  ;;  %v727_v38 = vcombine.low %v65_v27, %v69_v28  ;;  %v903_v46 = vld [vmem:[#allocation5 + $0x138] sm:$0xff]  ;;  %v742_v49 = vcombine.low %v897_v42, %v899_v44  ;;  %v58_v55 = vld [vmem:[#allocation5 + $0x90] sm:$0xff]  ;;  %v400_v9 = vld [vmem:[#allocation5 + $0x100] sm:$0xff]  ;;  %v743_v27 = vcombine.high %v897_v42, %v899_v44  ;;  %p818_p6 = pnand %p817_p5, %p811_p2 }
  0x30   :  { %280 = vmatpush1.bf16.msra.mxu1 %v711_v22  ;;  %240 = vmatprep.subr.bf16.mxu0 %v718_v23  ;;  %v51_v47 = vld [vmem:[#allocation5 + $0x58] sm:$0xff]  ;;  %v744_v50 = vcombine.low %v901_v45, %v903_v46  ;;  %v62_v56 = vld [vmem:[#allocation5 + $0xb0] sm:$0xff]  ;;  %v404_v10 = vld [vmem:[#allocation5 + $0x120] sm:$0xff]  ;;  %v745_v28 = vcombine.high %v901_v45, %v903_v46 }
  0x31   :  { %281 = vmatprep.subr.bf16.mxu1 %v720_v24  ;;  %v55_v48 = vld [vmem:[#allocation5 + $0x78] sm:$0xff]  ;;  %v722_v61 = vcombine.high %v58_v55, %v62_v56  ;;  %v66_v63 = vld [vmem:[#allocation5 + $0xd0] sm:$0xff]  ;;  %v721_v5 = vcombine.low %v58_v55, %v62_v56  ;;  %v401_v11 = vld [vmem:[#allocation5 + $0x108] sm:$0xff]  ;;  %v739_v15 = vcombine.high %v400_v9, %v404_v10  ;;  %v738_v21 = vcombine.low %v400_v9, %v404_v10 }
  0x32   :  { %v716_v54 = vcombine.high %v51_v47, %v55_v48  ;;  %v59_v57 = vld [vmem:[#allocation5 + $0x98] sm:$0xff]  ;;  %v715_v60 = vcombine.low %v51_v47, %v55_v48  ;;  %v70_v2 = vld [vmem:[#allocation5 + $0xf0] sm:$0xff]  ;;  %v405_v12 = vld [vmem:[#allocation5 + $0x128] sm:$0xff] }
  0x33   :  { %241 = vmatpush1.bf16.msra.mxu0 %v717_v29  ;;  %v63_v58 = vld [vmem:[#allocation5 + $0xb8] sm:$0xff]  ;;  %v730_v7 = vcombine.high %v66_v63, %v70_v2  ;;  %v729_v13 = vcombine.low %v66_v63, %v70_v2  ;;  %v741_v16 = vcombine.high %v401_v11, %v405_v12  ;;  %v408_v17 = vld [vmem:[#allocation5 + $0x140] sm:$0xff]  ;;  %v409_v19 = vld [vmem:[#allocation5 + $0x148] sm:$0xff]  ;;  %v740_v22 = vcombine.low %v401_v11, %v405_v12 }
  0x34   :  { %282 = vmatpush1.bf16.msra.mxu1 %v719_v30  ;;  %242 = vmatprep.subr.bf16.mxu0 %v726_v31  ;;  %v724_v62 = vcombine.high %v59_v57, %v63_v58  ;;  %v67_v3 = vld [vmem:[#allocation5 + $0xd8] sm:$0xff]  ;;  %v723_v6 = vcombine.low %v59_v57, %v63_v58  ;;  %v412_v18 = vld [vmem:[#allocation5 + $0x160] sm:$0xff]  ;;  %v413_v20 = vld [vmem:[#allocation5 + $0x168] sm:$0xff] }
  0x35   :  { %283 = vmatprep.subr.bf16.mxu1 %v728_v32  ;;  %v71_v4 = vld [vmem:[#allocation5 + $0xf8] sm:$0xff]  ;;  %v747_v23 = vcombine.high %v408_v17, %v412_v18  ;;  %v749_v24 = vcombine.high %v409_v19, %v413_v20  ;;  %v746_v25 = vcombine.low %v408_v17, %v412_v18  ;;  %v748_v26 = vcombine.low %v409_v19, %v413_v20  ;;  %v414_v29 = vld [vmem:[#allocation5 + $0x170] sm:$0xff] }
  0x36   :  { %v732_v8 = vcombine.high %v67_v3, %v71_v4  ;;  %v731_v14 = vcombine.low %v67_v3, %v71_v4  ;;  %v411_v30 = vld [vmem:[#allocation5 + $0x158] sm:$0xff] }
  0x37   :  { %243 = vmatpush1.bf16.msra.mxu0 %v725_v37  ;;  %v415_v31 = vld [vmem:[#allocation5 + $0x178] sm:$0xff] }
  0x38   :  { %284 = vmatpush1.bf16.msra.mxu1 %v727_v38  ;;  %318 = vmatprep.subr.bf16.mxu0 %v706_v39  ;;  %v753_v33 = vcombine.high %v411_v30, %v415_v31  ;;  %v752_v36 = vcombine.low %v411_v30, %v415_v31 }
  0x39   :  { %359 = vmatprep.subr.bf16.mxu1 %v708_v43 }
  0x3a   :  { %733 = vmatmul.mubr.msk.bf16.vlgmr.msra.gmra.mrb[0].mxu0 %vm232_vm0, %v893_v1 }
  0x3b   :  { %734 = vmatmul.mubr.msk.bf16.vlgmr.msra.gmra.mrb[0].mxu1 %vm232_vm0, %v893_v1  ;;  %319 = vmatpush1.bf16.msra.mxu0 %v705_v51 }
  0x3c   :  { %360 = vmatpush1.bf16.msra.mxu1 %v707_v52  ;;  %320 = vmatprep.subr.bf16.mxu0 %v714_v53 }
  0x3d   :  { %361 = vmatprep.subr.bf16.mxu1 %v716_v54  ;;  %350 = vmatprep.mubr.bf16.mxu0 %v842_v0 }
  0x3e   :  { %391 = vmatprep.mubr.bf16.mxu1 %v842_v0 }
  0x3f   :  { %321 = vmatpush1.bf16.msra.mxu0 %v713_v59 }
  0x40   :  { %362 = vmatpush1.bf16.msra.mxu1 %v715_v60  ;;  %322 = vmatprep.subr.bf16.mxu0 %v722_v61 }
  0x41   :  { %363 = vmatprep.subr.bf16.mxu1 %v724_v62 }
  0x43   :  { %323 = vmatpush1.bf16.msra.mxu0 %v721_v5 }
  0x44   :  { %364 = vmatpush1.bf16.msra.mxu1 %v723_v6  ;;  %324 = vmatprep.subr.bf16.mxu0 %v730_v7 }
  0x45   :  { %365 = vmatprep.subr.bf16.mxu1 %v732_v8 }
  0x47   :  { %325 = vmatpush1.bf16.msra.mxu0 %v729_v13 }
  0x48   :  { %366 = vmatpush1.bf16.msra.mxu1 %v731_v14  ;;  %505 = vmatprep.subr.bf16.mxu0 %v739_v15 }
  0x49   :  { %546 = vmatprep.subr.bf16.mxu1 %v741_v16 }
  0x4a   :  { %735 = vmatmul.mubr.msk.bf16.vlgmr.msra.gmra.mrb[4].mxu0 %vm232_vm0, %v893_v1 }
  0x4b   :  { %736 = vmatmul.mubr.msk.bf16.vlgmr.msra.gmra.mrb[4].mxu1 %vm232_vm0, %v893_v1  ;;  %506 = vmatpush1.bf16.msra.mxu0 %v738_v21  ;;  %v410_v1 = vld [vmem:[#allocation5 + $0x150] sm:$0xff] }
  0x4c   :  { %547 = vmatpush1.bf16.msra.mxu1 %v740_v22  ;;  %507 = vmatprep.subr.bf16.mxu0 %v747_v23  ;;  %v751_v32 = vcombine.high %v410_v1, %v414_v29  ;;  %v750_v35 = vcombine.low %v410_v1, %v414_v29 }
  0x4d   :  { %548 = vmatprep.subr.bf16.mxu1 %v749_v24  ;;  %537 = vmatprep.mubr.bf16.mxu0 %v842_v0 }
  0x4e   :  { %578 = vmatprep.mubr.bf16.mxu1 %v842_v0 }
  0x4f   :  { %508 = vmatpush1.bf16.msra.mxu0 %v746_v25 }
  0x50   :  { %549 = vmatpush1.bf16.msra.mxu1 %v748_v26  ;;  %587 = vmatprep.subr.bf16.mxu0 %v743_v27 }
  0x51   :  { %628 = vmatprep.subr.bf16.mxu1 %v745_v28 }
  0x9b   :  { %v420_v34 = vpop.permute.xlu0 %419 }
  0x9c   :  { %754 = vmatmul.mubr.msk.bf16.vlgmr.msra.gmra.mrb[8].mxu0 %vm501_vm1, %v420_v34  ;;  %755 = vmatmul.mubr.msk.bf16.vlgmr.msra.gmra.mrb[8].mxu1 %vm501_vm1, %v420_v34 }
  0x9d   :  { %588 = vmatpush1.bf16.msra.mxu0 %v742_v49  ;;  %629 = vmatpush1.bf16.msra.mxu1 %v744_v50 }
  0x9e   :  { %589 = vmatprep.subr.bf16.mxu0 %v751_v32  ;;  %630 = vmatprep.subr.bf16.mxu1 %v753_v33 }
  0x9f   :  { %619 = vmatprep.mubr.bf16.mxu0 %v842_v0  ;;  %660 = vmatprep.mubr.bf16.mxu1 %v842_v0 }
  0xa1   :  { %590 = vmatpush1.bf16.msra.mxu0 %v750_v35  ;;  %631 = vmatpush1.bf16.msra.mxu1 %v752_v36 }
  0xa4   :  { %756 = vmatmul.mubr.msk.bf16.vlgmr.msra.gmra.mrb[12].mxu0 %vm501_vm1, %v420_v34  ;;  %757 = vmatmul.mubr.msk.bf16.vlgmr.msra.gmra.mrb[12].mxu1 %vm501_vm1, %v420_v34 }
 0x10d   :  { %v270_v37 = vpop.f32.mrb[0].mxu0 }
 0x10e   :  { %v311_v38 = vpop.f32.mrb[0].mxu1  ;;  %v272_v39 = vpop.f32.mrb[1].mxu0 }
 0x10f   :  { %v313_v40 = vpop.f32.mrb[1].mxu1  ;;  %v274_v41 = vpop.f32.mrb[2].mxu0 }
 0x110   :  { %v315_v42 = vpop.f32.mrb[2].mxu1  ;;  %v275_v43 = vpop.f32.mrb[3].mxu0 }
 0x111   :  { %v316_v44 = vpop.f32.mrb[3].mxu1 }
 0x11d   :  { %v352_v45 = vpop.f32.mrb[4].mxu0 }
 0x11e   :  { %v393_v46 = vpop.f32.mrb[4].mxu1  ;;  %v354_v47 = vpop.f32.mrb[5].mxu0 }
 0x11f   :  { %v395_v48 = vpop.f32.mrb[5].mxu1  ;;  %v356_v49 = vpop.f32.mrb[6].mxu0 }
 0x120   :  { %v397_v0 = vpop.f32.mrb[6].mxu1  ;;  %v357_v50 = vpop.f32.mrb[7].mxu0 }
 0x121   :  { %v398_v51 = vpop.f32.mrb[7].mxu1 }
 0x16f   :  { %v539_v52 = vpop.f32.mrb[8].mxu0  ;;  %v580_v53 = vpop.f32.mrb[8].mxu1 }
 0x170   :  { %v669_v54 = vmul.f32 %v539_v52, %v270_v37  ;;  %v671_v55 = vmul.f32 %v580_v53, %v311_v38  ;;  %v541_v56 = vpop.f32.mrb[9].mxu0  ;;  %v582_v57 = vpop.f32.mrb[9].mxu1 }
 0x171   :  { %v670_v58 = vmul.f32 %v541_v56, %v272_v39  ;;  %v672_v59 = vmul.f32 %v582_v57, %v313_v40  ;;  %v543_v60 = vpop.f32.mrb[10].mxu0  ;;  %v584_v61 = vpop.f32.mrb[10].mxu1 }
 0x172   :  { %677 = vst [vmem:[#allocation7] sm:$0xff] %v669_v54  ;;  %679 = vst [vmem:[#allocation7 + $0x10] sm:$0xff] %v671_v55  ;;  %v544_v62 = vpop.f32.mrb[11].mxu0  ;;  %v585_v63 = vpop.f32.mrb[11].mxu1 }
 0x173   :  { %678 = vst [vmem:[#allocation7 + $0x8] sm:$0xff] %v670_v58  ;;  %680 = vst [vmem:[#allocation7 + $0x18] sm:$0xff] %v672_v59 }
 0x177   :  { %v621_v2 = vpop.f32.mrb[12].mxu0  ;;  %v662_v3 = vpop.f32.mrb[12].mxu1 }
 0x178   :  { %v673_v4 = vmul.f32 %v621_v2, %v352_v45  ;;  %v675_v5 = vmul.f32 %v662_v3, %v393_v46  ;;  %v623_v6 = vpop.f32.mrb[13].mxu0  ;;  %v664_v7 = vpop.f32.mrb[13].mxu1 }
 0x179   :  { %v674_v8 = vmul.f32 %v623_v6, %v354_v47  ;;  %v676_v9 = vmul.f32 %v664_v7, %v395_v48  ;;  %v625_v10 = vpop.f32.mrb[14].mxu0  ;;  %v666_v11 = vpop.f32.mrb[14].mxu1 }
 0x17a   :  { %681 = vst [vmem:[#allocation7 + $0x20] sm:$0xff] %v673_v4  ;;  %683 = vst [vmem:[#allocation7 + $0x30] sm:$0xff] %v675_v5  ;;  %v626_v12 = vpop.f32.mrb[15].mxu0  ;;  %v667_v13 = vpop.f32.mrb[15].mxu1 }
 0x17b   :  { %682 = vst [vmem:[#allocation7 + $0x28] sm:$0xff] %v674_v8  ;;  %684 = vst [vmem:[#allocation7 + $0x38] sm:$0xff] %v676_v9 }
 0x17c   :  { %821 = shalt.err (!%p818_p6)
}
 0x17d   :  { %s822_s11 = scalar_lea.hbm %s951_s2, 1024 }
 0x17e   :  { %p823_p7 = scmp.ne.s32.totalorder %s951_s2, %s822_s11  ;;  %p826_p8 = scmp.lt.u32.totalorder %s822_s11, %s951_s2 }
 0x180   :  { %p828_p9 = pnand %p826_p8, %p823_p7 }
 0x182   :  { %831 = shalt.err (!%p828_p9)
}
 0x183   :  { %694 = dma.vmem_to_hbm [thread:$0]  %s692_s7, 1024, %s951_s2, [#allocation4]  }
 0x184   :  { %836 = dma.done.wait [#allocation4], 1024  }
 0x185   :  { %837 = vsyncadd [#allocation4], 4294966272 }
 0x186   :  { %698 = vsyncpa [#allocation3], 1 }
 0x187   :  { %699 = vsyncpa [#allocation6], 1 }
 0x188   :  { %700 = vsyncpa [#allocation4], 1 }

</bundles_post_ra>
